<compile_context>
chip_gen: v7x
topology: tpu7x:2x2x1
jax: 0.10.0
libtpu: 0.0.40
codegen_flags: <defaults>
</compile_context>

<pallas_src>
import math
from functools import partial

import numpy as np
import jax
import jax.numpy as jnp
from jax import lax
from jax.experimental import pallas as pl
from jax.experimental.pallas import tpu as pltpu


# ---------------------------------------------------------------------------
# Minimal stand-ins for the nfn NetworkSpec / WeightSpaceFeatures containers.
# ---------------------------------------------------------------------------
class TensorSpec:
    def __init__(self, shape):
        self.shape = tuple(int(s) for s in shape)


class NetworkSpec:
    def __init__(self, weight_shapes, bias_shapes):
        self.weight_spec = [TensorSpec(s) for s in weight_shapes]
        self.bias_spec = [TensorSpec(s) for s in bias_shapes]


class WeightSpaceFeatures:
    def __init__(self, weights, biases):
        self.weights = tuple(weights)
        self.biases = tuple(biases)


# ---------------------------------------------------------------------------
# Pallas kernel: scaled-dot-product cross attention for one (batch, P) block.
#   q  = embeddings tile (TP, C)               [shared across the batch]
#   kv = latents block  (block_b, L, C)
#   out[b] = softmax(q kv[b]^T / sqrt(C)) kv[b]   -> (TP, C)
# ---------------------------------------------------------------------------
def _cross_attn_kernel(e_ref, kv_ref, o_ref, *, scale, bt):
    # Fold 1/sqrt(C) into q once per block (TP*C multiplies) instead of
    # scaling the (TP, L) score matrix per batch.
    q = e_ref[...]
    q = q * jnp.asarray(scale, dtype=q.dtype)                  # (TP, C)

    def body(b, carry):
        kv = kv_ref[b]                                         # (L, C)

        # Scores: contract the C axis of both operands directly (q @ kv^T
        # without an XLU transpose); accumulate in f32 on the MXU.
        s = lax.dot_general(q, kv, (((1,), (1,)), ((), ())),
                            preferred_element_type=jnp.float32)  # (TP, L)

        # Numerically stable softmax with EXACT normalization: the denominator
        # is only TP elements, so the divide is negligible and we avoid the
        # approx-reciprocal error that broke the 1e-3 check.
        m = jnp.max(s, axis=-1, keepdims=True)
        p = jnp.exp(s - m)
        denom = jnp.sum(p, axis=-1, keepdims=True)
        p = (p * (1.0 / denom)).astype(kv.dtype)               # MXU operand dtype

        out = jnp.dot(p, kv, preferred_element_type=jnp.float32)  # (TP, C)
        o_ref[b] = out.astype(o_ref.dtype)
        return carry

    # Bounded unrolled loop (bt <= 8) keeps register pressure / code size sane.
    lax.fori_loop(0, bt, body, 0, unroll=True)


def _round_up(x, m):
    return ((x + m - 1) // m) * m


def cross_attention(embeddings, latents, *, block_b=None, tile_p=512):
    """embeddings: (P, C), latents: (B, L, C) -> (B, P, C)."""
    P, C = embeddings.shape
    B, L, C2 = latents.shape
    assert C == C2
    scale = 1.0 / math.sqrt(C)

    itemsize = jnp.dtype(latents.dtype).itemsize
    # Sublane packing: f32 -> 8 rows/vreg, bf16 -> 16, int8/fp8 -> 32.
    sublane = {4: 8, 2: 16, 1: 32}.get(itemsize, 8)

    # ---- P tiling (second, parallel grid axis) ------------------------------
    if P <= tile_p:
        TP, nblk_p, P_pad = P, 1, P          # full-dim block: no P padding
    else:
        TP = _round_up(tile_p, sublane)
        P_pad = _round_up(P, TP)
        nblk_p = P_pad // TP

    # ---- batch blocking ------------------------------------------------------
    # ~1.5 MiB of latents + output per grid step: big enough to amortize the
    # ~0.35 us/step overhead, small enough to double-buffer comfortably on
    # every generation (v5e 16 MiB scoped default, v7x 64 MiB physical VMEM).
    if block_b is None:
        budget = 1536 * 1024
        per_batch = (L * C + TP * C) * itemsize
        block_b = max(1, budget // per_batch)
    block_b = int(min(block_b, 8, B))        # cap the in-kernel unroll at 8
    # Keep >= ~8 total grid steps when the batch allows it, so the BlockSpec
    # pipeline has blocks to prefetch and both v7x TensorCores get work.
    min_steps = 8
    steps_b_needed = pl.cdiv(min_steps, nblk_p)
    block_b = max(1, min(block_b, max(1, B // steps_b_needed)))
    nblk_b = pl.cdiv(B, block_b)
    B_pad = nblk_b * block_b

    # ---- HBM-side padding only where strictly required ----------------------
    emb_in = embeddings
    if P_pad != P:
        emb_in = jnp.pad(embeddings, ((0, P_pad - P), (0, 0)))
    lat_in = latents
    if B_pad != B:
        lat_in = jnp.pad(latents, ((0, B_pad - B), (0, 0), (0, 0)))

    # ---- VMEM accounting (inputs + output double-buffered + f32 live vals) --
    lat_blk = block_b * L * C * itemsize
    out_blk = block_b * TP * C * itemsize
    q_blk = TP * C * itemsize
    live_f32 = (2 * TP * L + TP * C) * 4     # s, p, out intermediates
    vmem_needed = 2 * (lat_blk + out_blk + q_blk) + live_f32
    vmem_limit = int(max(16 << 20, min(vmem_needed + (8 << 20), 48 << 20)))

    cost = pl.CostEstimate(
        flops=4 * B * P * L * C,                                   # QK^T + PV
        transcendentals=B * P * L,                                  # exp
        bytes_accessed=(B * L * C + B * P * C + P * C) * itemsize,
    )

    out = pl.pallas_call(
        partial(_cross_attn_kernel, scale=scale, bt=block_b),
        out_shape=jax.ShapeDtypeStruct((B_pad, P_pad, C), latents.dtype),
        grid_spec=pltpu.PrefetchScalarGridSpec(
            num_scalar_prefetch=0,
            # P axis innermost: the latents block index is unchanged across it,
            # so the latents tile stays resident (no re-DMA per P tile).
            grid=(nblk_b, nblk_p),
            in_specs=[
                pl.BlockSpec((TP, C), lambda i, j: (j, 0)),             # q tile
                pl.BlockSpec((block_b, L, C), lambda i, j: (i, 0, 0)),  # latents
            ],
            out_specs=pl.BlockSpec((block_b, TP, C), lambda i, j: (i, j, 0)),
        ),
        compiler_params=pltpu.CompilerParams(
            dimension_semantics=("parallel", "parallel"),
            vmem_limit_bytes=vmem_limit),
        cost_estimate=cost,
    )(emb_in, lat_in)

    if B_pad != B or P_pad != P:
        out = out[:B, :P]
    return out


# ---------------------------------------------------------------------------
# UnflattenWeights: pure reshaping glue (matches the PyTorch module exactly).
# ---------------------------------------------------------------------------
def unflatten_weights(network_spec, x):
    # x: (B, num_params, n_chan)
    n_chan = x.shape[2]
    out_weights, out_biases = [], []
    curr_idx = 0
    for weight_spec, bias_spec in zip(network_spec.weight_spec,
                                      network_spec.bias_spec):
        num_wts = int(np.prod(weight_spec.shape))
        num_bs = int(np.prod(bias_spec.shape))
        wt = jnp.transpose(x[:, curr_idx:curr_idx + num_wts], (0, 2, 1))
        wt = wt.reshape(-1, n_chan, *weight_spec.shape)
        out_weights.append(wt)
        curr_idx += num_wts
        bs = jnp.transpose(x[:, curr_idx:curr_idx + num_bs], (0, 2, 1))
        bs = bs.reshape(-1, n_chan, *bias_spec.shape)
        out_biases.append(bs)
        curr_idx += num_bs
    return WeightSpaceFeatures(out_weights, out_biases)


def cross_attn_decoder(network_spec, embeddings, latents):
    attn = cross_attention(embeddings, latents)   # (B, P, C) -- Pallas hot path
    return unflatten_weights(network_spec, attn)


# ---------------------------------------------------------------------------
# Reference (pure JAX) for verification.
# ---------------------------------------------------------------------------
def _ref_attention(embeddings, latents):
    P, C = embeddings.shape
    scale = 1.0 / math.sqrt(C)
    s = jnp.einsum('pc,blc->bpl', embeddings, latents) * scale
    p = jax.nn.softmax(s, axis=-1)
    return jnp.einsum('bpl,blc->bpc', p, latents)


if __name__ == "__main__":
    # Tiny target network: MLP with layers (4 -> 8 -> 2)
    network_spec = NetworkSpec(
        weight_shapes=[(8, 4), (2, 8)],
        bias_shapes=[(8,), (2,)],
    )
    num_params = sum(int(np.prod(ws.shape)) for ws in network_spec.weight_spec) \
               + sum(int(np.prod(bs.shape)) for bs in network_spec.bias_spec)   # 58

    B, L, C = 2, 8, 32   # batch, latent seq, channels

    key = jax.random.PRNGKey(0)
    k_emb, k_lat = jax.random.split(key)
    embeddings = jax.random.normal(k_emb, (num_params, C), dtype=jnp.float32)
    latents = jax.random.normal(k_lat, (B, L, C), dtype=jnp.float32)

    wsf = cross_attn_decoder(network_spec, embeddings, latents)
    jax.block_until_ready(wsf.weights + wsf.biases)

    # Correctness check of the Pallas attention against a pure-JAX reference.
    attn_pallas = jax.block_until_ready(cross_attention(embeddings, latents))
    attn_ref = _ref_attention(embeddings, latents)
    assert np.allclose(np.asarray(attn_pallas), np.asarray(attn_ref),
                       atol=1e-3, rtol=1e-3)

    # Shape sanity versus the PyTorch module's semantics.
    assert wsf.weights[0].shape == (B, C, 8, 4)
    assert wsf.biases[0].shape == (B, C, 8)
    assert wsf.weights[1].shape == (B, C, 2, 8)
    assert wsf.biases[1].shape == (B, C, 2)

    print("KERNEL_OK")
</pallas_src>

<mosaic_0001>
module attributes {stable_mosaic.version = 11 : i64} {
  func.func @_cross_attn_kernel(%arg0: i32, %arg1: i32, %arg2: memref<58x32xf32, #tpu.memory_space<vmem>>, %arg3: memref<1x8x32xf32, #tpu.memory_space<vmem>>, %arg4: memref<1x58x32xf32, #tpu.memory_space<vmem>>) attributes {dimension_semantics = [#tpu.dimension_semantics<parallel>, #tpu.dimension_semantics<parallel>], iteration_bounds = array<i64: 2, 1>, scalar_prefetch = 0 : i64, scratch_operands = 0 : i64, tpu.core_type = #tpu.core_type<tc>, window_params = [{transform_indices = @transform_0, window_bounds = array<i64: 58, 32>}, {transform_indices = @transform_1, window_bounds = array<i64: 1, 8, 32>}, {transform_indices = @transform_2, window_bounds = array<i64: 1, 58, 32>}]} {
    %c0 = arith.constant 0 : index
    %c0_0 = arith.constant 0 : index
    %0 = vector.load %arg2[%c0, %c0_0] : memref<58x32xf32, #tpu.memory_space<vmem>>, vector<58x32xf32>
    %cst = arith.constant 0.176776692 : f32
    %1 = vector.broadcast %cst : f32 to vector<58x32xf32>
    %2 = arith.mulf %0, %1 : vector<58x32xf32>
    %c0_i32 = arith.constant 0 : i32
    %3 = arith.index_cast %c0_i32 : i32 to index
    %c0_1 = arith.constant 0 : index
    %c0_2 = arith.constant 0 : index
    %4 = vector.load %arg3[%3, %c0_1, %c0_2] : memref<1x8x32xf32, #tpu.memory_space<vmem>>, vector<1x8x32xf32>
    %5 = vector.shape_cast %4 : vector<1x8x32xf32> to vector<8x32xf32>
    %cst_3 = arith.constant dense<0.000000e+00> : vector<58x8xf32>
    %6 = tpu.matmul %2, %5, %cst_3 {dimension_numbers = #tpu.dot_dimension_numbers<[1], [1], [0], [0], [0, 0, 1, 0], [], []>} : vector<58x32xf32>, vector<8x32xf32>, vector<58x8xf32> -> vector<58x8xf32>
    %cst_4 = arith.constant dense<0xFF800000> : vector<58xf32>
    %7 = vector.multi_reduction <maximumf>, %6, %cst_4 [1] : vector<58x8xf32> to vector<58xf32>
    %8 = vector.shape_cast %7 : vector<58xf32> to vector<58x1xf32>
    %9 = vector.broadcast %8 : vector<58x1xf32> to vector<58x8xf32>
    %10 = arith.subf %6, %9 : vector<58x8xf32>
    %11 = math.exp %10 : vector<58x8xf32>
    %cst_5 = arith.constant dense<0.000000e+00> : vector<58xf32>
    %12 = vector.multi_reduction <add>, %11, %cst_5 [1] : vector<58x8xf32> to vector<58xf32>
    %13 = vector.shape_cast %12 : vector<58xf32> to vector<58x1xf32>
    %cst_6 = arith.constant 1.000000e+00 : f32
    %14 = vector.broadcast %cst_6 : f32 to vector<58x1xf32>
    %15 = arith.divf %14, %13 : vector<58x1xf32>
    %16 = vector.broadcast %15 : vector<58x1xf32> to vector<58x8xf32>
    %17 = arith.mulf %11, %16 : vector<58x8xf32>
    %cst_7 = arith.constant dense<0.000000e+00> : vector<58x32xf32>
    %18 = tpu.matmul %17, %5, %cst_7 {dimension_numbers = #tpu.dot_dimension_numbers<[1], [0], [0], [1], [0, 0, 1, 1], [], []>} : vector<58x8xf32>, vector<8x32xf32>, vector<58x32xf32> -> vector<58x32xf32>
    %19 = arith.index_cast %c0_i32 : i32 to index
    %c0_8 = arith.constant 0 : index
    %c0_9 = arith.constant 0 : index
    %20 = vector.load %arg4[%19, %c0_8, %c0_9] : memref<1x58x32xf32, #tpu.memory_space<vmem>>, vector<1x58x32xf32>
    %21 = vector.shape_cast %20 : vector<1x58x32xf32> to vector<58x32xf32>
    %22 = vector.shape_cast %18 : vector<58x32xf32> to vector<1x58x32xf32>
    tpu.vector_store %arg4[%19, %c0_8, %c0_9], %22 {strides = array<i32>} : memref<1x58x32xf32, #tpu.memory_space<vmem>>, vector<1x58x32xf32>,
    %c1_i32 = arith.constant 1 : i32
    return
  }
  func.func @transform_0(%arg0: i32, %arg1: i32) -> (i32, i32) {
    %c0_i32 = arith.constant 0 : i32
    %c0_i32_0 = arith.constant 0 : i32
    return %arg1, %c0_i32 : i32, i32
  }
  func.func @transform_1(%arg0: i32, %arg1: i32) -> (i32, i32, i32) {
    %c0_i32 = arith.constant 0 : i32
    %c0_i32_0 = arith.constant 0 : i32
    %c0_i32_1 = arith.constant 0 : i32
    return %arg0, %c0_i32, %c0_i32_0 : i32, i32, i32
  }
  func.func @transform_2(%arg0: i32, %arg1: i32) -> (i32, i32, i32) {
    %c0_i32 = arith.constant 0 : i32
    %c0_i32_0 = arith.constant 0 : i32
    return %arg0, %arg1, %c0_i32 : i32, i32, i32
  }
}

</mosaic_0001>

<bundles_post_ra>
// kernel: tpu_custom_call.1
= control target key start
LH: loop header
LB: loop body
LE: loop exit
PB: predicated region body
PF: predicated region fallthrough
CT: control target
= control target key end

     0   :  { %s838_s9 = smov 0   ;;  %s840_s10 = smov 0   ;;  %s940_s0 = inlined_call_operand.vmem [shape: f32[58,32], index: 0, kind: input, shape index: {}]   ;;  %s941_s1 = inlined_call_operand.vmem [shape: f32[2,8,32], index: 1, kind: input, shape index: {}]   ;;  %s942_s2 = inlined_call_operand.vmem [shape: f32[2,58,32], index: 2, kind: output, shape index: {}]  }
   0x1   :  { %s842_s11 = smov 0  }
   0x2 LB: > { %s24_s12 = sadd.s32 1, %s817_s10  ;;  %p673_p0 = scmp.ge.s32.totalorder %s821_s11, 1  ;;  %s821_s11 = sphi %s842_s11, %s12_s11   ;;  %s817_s10 = sphi %s840_s10, %s944_s10   ;;  %s813_s9 = sphi %s838_s9, %s943_s9  }
   0x3   : > { %p26_p1 = scmp.ge.s32.totalorder %s24_s12, 2  ;;  %p136_p2 = scmp.lt.s32.totalorder %s821_s11, 3 }
   0x5   : > { %s946_s12 = smov (%p26_p1, %s24_s12), 0  ;;  %p137_p3 = pnand %p673_p0, %p136_p2 }
   0x6   : > { %p172_p4 = scmp.lt.s32.totalorder (!%p137_p3), %s813_s9, 1  ;;  %v186_v0 = vld [vmem:[%s940_s0] sm:$0xff] (!%p137_p3)  ;;  %vm203_vm0 = vcmask (!%p137_p3), 261120   ;;  %v187_v2 = vld [vmem:[%s940_s0 + $0x8] sm:$0xff] (!%p137_p3)  ;;  %v188_v3 = vld [vmem:[%s940_s0 + $0x10] sm:$0xff] (!%p137_p3)  ;;  %vm336_vm1 = vcmask (!%p137_p3), 64512  }
   0x7   : > { %140 = sbr.rel (%p137_p3) target bundleno = 779 (0x30b), region = 28  ;;  %v194_v1 = vmul.f32 (!%p137_p3), 0.17677669, %v186_v0  ;;  %v195_v5 = vmul.f32 (!%p137_p3), 0.17677669, %v187_v2  ;;  %v189_v7 = vld [vmem:[%s940_s0 + $0x18] sm:$0xff] (!%p137_p3) }
   0x8   : > { %v196_v6 = vmul.f32 (!%p137_p3), 0.17677669, %v188_v3  ;;  %v190_v8 = vld [vmem:[%s940_s0 + $0x20] sm:$0xff] (!%p137_p3)  ;;  %v197_v9 = vmul.f32 (!%p137_p3), 0.17677669, %v189_v7  ;;  %v191_v11 = vld [vmem:[%s940_s0 + $0x28] sm:$0xff] (!%p137_p3) }
   0x9   : > { %717 = vmatprep.mubr.msk.f32.mxu0 (!%p137_p3), %vm203_vm0, %v194_v1  ;;  %v198_v10 = vmul.f32 (!%p137_p3), 0.17677669, %v190_v8  ;;  %v192_v12 = vld [vmem:[%s940_s0 + $0x30] sm:$0xff] (!%p137_p3)  ;;  %v199_v13 = vmul.f32 (!%p137_p3), 0.17677669, %v191_v11  ;;  %vm358_vm2 = vcmask (!%p137_p3), 58368  }
   0xa   : > { %v200_v14 = vmul.f32 (!%p137_p3), 0.17677669, %v192_v12  ;;  %v193_v15 = vld [vmem:[%s940_s0 + $0x38] sm:$0x3] (!%p137_p3)  ;;  %vm570_vm3 = vcmask (!%p137_p3), 254976  }
   0xb   : > { %v201_v16 = vmul.f32 (!%p137_p3), 0.17677669, %v193_v15 }
   0xe   : > { %s948_s9 = smov (!%p172_p4, %s813_s9), 1 }
   0xf   : > { %s674_s15 = sshll.u32 %s948_s9, 3  ;;  %s696_s5 = sshll.u32 %s948_s9, 6 }
  0x10   : > { %s175_s20 = scalar_lea.vmem %s941_s1, %s674_s15  ;;  %s184_s8 = scalar_lea.vmem %s942_s2, %s696_s5 }
  0x11   : > { %v202_v4 = vld [vmem:[%s175_s20] sm:$0xff] }
  0x12   : > { %715 = vmatprep.subr.msk.mxu0 %vm203_vm0, %v202_v4  ;;  %729 = vmatprep.subr.mxu1 %v202_v4 }
  0x13   : > { %716 = vmatpush3.xpose.msk.msra.mxu0 %vm203_vm0, %v202_v4  ;;  %730 = vmatpush3.msra.mxu1 %v202_v4 }
  0x16   : > { %718 = vmatmul.mubr.msk.f32.vlgmr.msra.gmra.mrb[0].mxu0 %vm203_vm0, %v195_v5 }
  0x17   : > { %720 = vmatprep.mubr.msk.f32.mxu0 %vm203_vm0, %v196_v6 }
  0x1a   : > { %721 = vmatmul.mubr.msk.f32.gmra.mrb[2].mxu0 %vm203_vm0, %v197_v9 }
  0x1b   : > { %723 = vmatprep.mubr.msk.f32.mxu0 %vm203_vm0, %v198_v10 }
  0x1e   : > { %724 = vmatmul.mubr.msk.f32.gmra.mrb[4].mxu0 %vm203_vm0, %v199_v13 }
  0x1f   : > { %726 = vmatprep.mubr.msk.f32.mxu0 %vm203_vm0, %v200_v14 }
  0x22   : > { %727 = vmatmul.mubr.msk.f32.gmra.mrb[6].mxu0 %vm203_vm0, %v201_v16 }
  0xe9   : > { %v719_v17 = vpop.f32.mrb[0].mxu0 }
  0xea   : > { %v297_v18 = vpop.f32.mrb[1].mxu0  ;;  %v340_v22 = vsel %vm336_vm1, %v719_v17, -inf }
  0xeb   : > { %v337_v19 = vsel %vm336_vm1, %v297_v18, -inf }
  0xec   : > { %338 = vmax.xlane.f32.xlu0 %v337_v19 }
  0xed   : > { %v722_v20 = vpop.f32.mrb[2].mxu0 }
  0xee   : > { %v307_v21 = vpop.f32.mrb[3].mxu0  ;;  %v346_v26 = vsel %vm336_vm1, %v722_v20, -inf }
  0xef   : > { %v343_v23 = vsel %vm336_vm1, %v307_v21, -inf }
  0xf0   : > { %341 = vmax.xlane.f32.xlu0 %v340_v22  ;;  %344 = vmax.xlane.f32.xlu1 %v343_v23 }
  0xf1   : > { %v725_v24 = vpop.f32.mrb[4].mxu0 }
  0xf2   : > { %v317_v25 = vpop.f32.mrb[5].mxu0  ;;  %v352_v30 = vsel %vm336_vm1, %v725_v24, -inf }
  0xf3   : > { %v349_v27 = vsel %vm336_vm1, %v317_v25, -inf }
  0xf4   : > { %347 = vmax.xlane.f32.xlu1 %v346_v26  ;;  %350 = vmax.xlane.f32.xlu0 %v349_v27 }
  0xf5   : > { %v728_v28 = vpop.f32.mrb[6].mxu0 }
  0xf6   : > { %v327_v29 = vpop.f32.mrb[7].mxu0  ;;  %v359_v32 = vsel %vm358_vm2, %v728_v28, -inf }
  0xf7   : > { %v355_v31 = vsel %vm336_vm1, %v327_v29, -inf }
  0xf8   : > { %353 = vmax.xlane.f32.xlu1 %v352_v30  ;;  %356 = vmax.xlane.f32.xlu0 %v355_v31 }
  0xfc   : > { %360 = vmax.xlane.f32.xlu1 %v359_v32 }
 0x179   : > { %v339_v33 = vpop.xlane.xlu0 %338 }
 0x17a   : > { %v362_v34 = vsub.f32 %v297_v18, %v339_v33 }
 0x17c   : > { %v370_v35 = vmul.f32 1.442695, %v362_v34 }
 0x17d   : > { %v342_v36 = vpop.xlane.xlu0 %341  ;;  %v345_v37 = vpop.xlane.xlu1 %344 }
 0x17e   : > { %767 = vpow2.f32 %v370_v35  ;;  %v363_v38 = vsub.f32 %v719_v17, %v342_v36  ;;  %v364_v39 = vsub.f32 %v307_v21, %v345_v37 }
 0x180   : > { %v372_v40 = vmul.f32 1.442695, %v363_v38  ;;  %v374_v41 = vmul.f32 1.442695, %v364_v39 }
 0x181   : > { %v348_v42 = vpop.xlane.xlu1 %347  ;;  %v351_v43 = vpop.xlane.xlu0 %350 }
 0x182   : > { %769 = vpow2.f32 %v372_v40  ;;  %v365_v44 = vsub.f32 %v722_v20, %v348_v42  ;;  %v366_v45 = vsub.f32 %v317_v25, %v351_v43 }
 0x183   : > { %771 = vpow2.f32 %v374_v41 }
 0x184   : > { %v376_v46 = vmul.f32 1.442695, %v365_v44  ;;  %v378_v47 = vmul.f32 1.442695, %v366_v45 }
 0x185   : > { %v354_v48 = vpop.xlane.xlu1 %353  ;;  %v357_v49 = vpop.xlane.xlu0 %356 }
 0x186   : > { %773 = vpow2.f32 %v376_v46  ;;  %v367_v50 = vsub.f32 %v725_v24, %v354_v48  ;;  %v368_v51 = vsub.f32 %v327_v29, %v357_v49 }
 0x187   : > { %775 = vpow2.f32 %v378_v47 }
 0x188   : > { %v768_v52 = vpop.eup %767  ;;  %v380_v53 = vmul.f32 1.442695, %v367_v50  ;;  %v382_v54 = vmul.f32 1.442695, %v368_v51 }
 0x189   : > { %v361_v55 = vpop.xlane.xlu1 %360  ;;  %v386_v56 = vsel %vm336_vm1, %v768_v52, 0.0 }
 0x18a   : > { %777 = vpow2.f32 %v380_v53  ;;  %v369_v57 = vsub.f32 %v728_v28, %v361_v55  ;;  %387 = vadd.xlane.f32.xlu0 %v386_v56 }
 0x18b   : > { %779 = vpow2.f32 %v382_v54 }
 0x18c   : > { %v770_v58 = vpop.eup %769  ;;  %v384_v59 = vmul.f32 1.442695, %v369_v57 }
 0x18d   : > { %v772_v60 = vpop.eup %771  ;;  %v389_v61 = vsel %vm336_vm1, %v770_v58, 0.0 }
 0x18e   : > { %781 = vpow2.f32 %v384_v59  ;;  %390 = vadd.xlane.f32.xlu1 %v389_v61  ;;  %v392_v62 = vsel %vm336_vm1, %v772_v60, 0.0 }
 0x18f   : > { %393 = vadd.xlane.f32.xlu0 %v392_v62 }
 0x190   : > { %v774_v63 = vpop.eup %773 }
 0x191   : > { %v776_v0 = vpop.eup %775  ;;  %v395_v1 = vsel %vm336_vm1, %v774_v63, 0.0 }
 0x192   : > { %396 = vadd.xlane.f32.xlu1 %v395_v1  ;;  %v398_v2 = vsel %vm336_vm1, %v776_v0, 0.0 }
 0x193   : > { %399 = vadd.xlane.f32.xlu0 %v398_v2 }
 0x194   : > { %v778_v3 = vpop.eup %777 }
 0x195   : > { %v780_v4 = vpop.eup %779  ;;  %v401_v5 = vsel %vm336_vm1, %v778_v3, 0.0 }
 0x196   : > { %402 = vadd.xlane.f32.xlu1 %v401_v5  ;;  %v404_v6 = vsel %vm336_vm1, %v780_v4, 0.0 }
 0x197   : > { %405 = vadd.xlane.f32.xlu0 %v404_v6 }
 0x198   : > { %v782_v7 = vpop.eup %781 }
 0x199   : > { %v407_v8 = vsel %vm358_vm2, %v782_v7, 0.0 }
 0x19a   : > { %408 = vadd.xlane.f32.xlu1 %v407_v8 }
 0x217   : > { %v388_v9 = vpop.xlane.xlu0 %387 }
 0x218   : > { %783 = vrcp.f32 %v388_v9 }
 0x21b   : > { %v391_v10 = vpop.xlane.xlu1 %390 }
 0x21c   : > { %785 = vrcp.f32 %v391_v10  ;;  %v394_v11 = vpop.xlane.xlu0 %393 }
 0x21d   : > { %787 = vrcp.f32 %v394_v11 }
 0x21f   : > { %v397_v12 = vpop.xlane.xlu1 %396 }
 0x220   : > { %789 = vrcp.f32 %v397_v12  ;;  %v400_v13 = vpop.xlane.xlu0 %399 }
 0x221   : > { %791 = vrcp.f32 %v400_v13 }
 0x222   : > { %v784_v14 = vpop.eup %783 }
 0x223   : > { %v403_v15 = vpop.xlane.xlu1 %402  ;;  %v426_v16 = vmul.f32 %v784_v14, %v768_v52 }
 0x224   : > { %793 = vrcp.f32 %v403_v15  ;;  %v406_v17 = vpop.xlane.xlu0 %405 }
 0x225   : > { %795 = vrcp.f32 %v406_v17  ;;  %731 = vmatprep.mubr.msk.f32.mxu1 %vm336_vm1, %v426_v16 }
 0x226   : > { %v786_v18 = vpop.eup %785 }
 0x227   : > { %v788_v19 = vpop.eup %787  ;;  %v409_v20 = vpop.xlane.xlu1 %408  ;;  %v427_v21 = vmul.f32 %v786_v18, %v770_v58 }
 0x228   : > { %797 = vrcp.f32 %v409_v20  ;;  %v428_v22 = vmul.f32 %v788_v19, %v772_v60 }
 0x229   : > { %732 = vmatmul.mubr.msk.f32.vlgmr.msra.gmra.mrb[0].mxu1 %vm336_vm1, %v427_v21 }
 0x22a   : > { %v790_v23 = vpop.eup %789  ;;  %734 = vmatprep.mubr.msk.f32.mxu1 %vm336_vm1, %v428_v22 }
 0x22b   : > { %v792_v24 = vpop.eup %791  ;;  %v429_v25 = vmul.f32 %v790_v23, %v774_v63 }
 0x22c   : > { %v430_v26 = vmul.f32 %v792_v24, %v776_v0 }
 0x22d   : > { %735 = vmatmul.mubr.msk.f32.gmra.mrb[2].mxu1 %vm336_vm1, %v429_v25 }
 0x22e   : > { %v794_v27 = vpop.eup %793  ;;  %737 = vmatprep.mubr.msk.f32.mxu1 %vm336_vm1, %v430_v26 }
 0x22f   : > { %v796_v28 = vpop.eup %795  ;;  %v431_v29 = vmul.f32 %v794_v27, %v778_v3 }
 0x230   : > { %v432_v30 = vmul.f32 %v796_v28, %v780_v4 }
 0x231   : > { %738 = vmatmul.mubr.msk.f32.gmra.mrb[4].mxu1 %vm336_vm1, %v431_v29 }
 0x232   : > { %v798_v31 = vpop.eup %797  ;;  %740 = vmatprep.mubr.msk.f32.mxu1 %vm336_vm1, %v432_v30 }
 0x233   : > { %v433_v32 = vmul.f32 %v798_v31, %v782_v7 }
 0x235   : > { %741 = vmatmul.mubr.msk.f32.gmra.mrb[6].mxu1 %vm336_vm1, %v433_v32 }
 0x2fc   : > { %v733_v33 = vpop.f32.mrb[0].mxu1 }
 0x2fd   : > { %564 = vst.msk [vmem:[%s184_s8 + $0x8] sm:$0xff] %vm203_vm0, %v733_v33  ;;  %v524_v34 = vpop.f32.mrb[1].mxu1 }
 0x2fe   : > { %563 = vst.msk [vmem:[%s184_s8] sm:$0xff] %vm203_vm0, %v524_v34 }
 0x300   : > { %v736_v35 = vpop.f32.mrb[2].mxu1 }
 0x301   : > { %566 = vst.msk [vmem:[%s184_s8 + $0x18] sm:$0xff] %vm203_vm0, %v736_v35  ;;  %v534_v36 = vpop.f32.mrb[3].mxu1 }
 0x302   : > { %565 = vst.msk [vmem:[%s184_s8 + $0x10] sm:$0xff] %vm203_vm0, %v534_v36 }
 0x304   : > { %v739_v37 = vpop.f32.mrb[4].mxu1 }
 0x305   : > { %568 = vst.msk [vmem:[%s184_s8 + $0x28] sm:$0xff] %vm203_vm0, %v739_v37  ;;  %v544_v38 = vpop.f32.mrb[5].mxu1 }
 0x306   : > { %567 = vst.msk [vmem:[%s184_s8 + $0x20] sm:$0xff] %vm203_vm0, %v544_v38 }
 0x308   : > { %v742_v39 = vpop.f32.mrb[6].mxu1 }
 0x309   : > { %571 = vst.msk [vmem:[%s184_s8 + $0x38] sm:$0x3] %vm570_vm3, %v742_v39  ;;  %v554_v40 = vpop.f32.mrb[7].mxu1 }
 0x30a   : > { %569 = vst.msk [vmem:[%s184_s8 + $0x30] sm:$0xff] %vm203_vm0, %v554_v40 }
 0x30b PF: > { %s12_s11 = sadd.s32 1, %s821_s11   ;;  %s943_s9 = smov %s817_s10 }
 0x30c   : > { %p9_p5 = scmp.ge.s32.totalorder %s12_s11, 4   ;;  %s944_s10 = smov %s946_s12 }
 0x30e   :  { %11 = sbr.rel (!%p9_p5) target bundleno = 2 (0x2), region = 61 }

</bundles_post_ra>
